<compile_context>
chip_gen: v6e
topology: v6e:2x2x1
jax: 0.10.0
libtpu: 0.0.40
codegen_flags: <defaults>
</compile_context>

<pallas_src>
import functools

import jax
import jax.numpy as jnp
from jax.experimental import pallas as pl
from jax.experimental.pallas import tpu as pltpu


# ----------------------------------------------------------------------------
# Kernel
# ----------------------------------------------------------------------------
def dueling_dqn_kernel(
    x_ref,                      # (tile, input_dim)       compute_dtype
    w1_ref, b1_ref,             # feature layer 1: input_dim -> h0
    w2_ref, b2_ref,             # feature layer 2: h0 -> h1
    wh_ref, bh_ref,             # fused V/A hidden: h1 -> 2*h2  ([vh | ah])
    wo_ref, bo_ref,             # fused block-diagonal head: 2*h2 -> head_width
    q_ref,                      # (tile, head_width)  f32, lane-dense
    *,
    output_dim: int,
    value_col: int,
    compute_dtype,
):
    x = x_ref[...]

    # feature_layers: Linear -> ReLU -> Linear -> ReLU  (f32 accumulation)
    h = jnp.dot(x, w1_ref[...], preferred_element_type=jnp.float32) + b1_ref[...]
    h = jnp.maximum(h, 0.0)
    f = jnp.dot(h.astype(compute_dtype), w2_ref[...],
                preferred_element_type=jnp.float32) + b2_ref[...]
    f = jnp.maximum(f, 0.0)

    # Fused value/advantage hidden layer: single 128-wide MXU pass -> [vh | ah]
    hid = jnp.dot(f.astype(compute_dtype), wh_ref[...],
                  preferred_element_type=jnp.float32) + bh_ref[...]
    hid = jnp.maximum(hid, 0.0)

    # Fused block-diagonal head: one lane-dense matmul.
    #   head[:, :output_dim]  = advantages  (from the 'ah' half of hid)
    #   head[:, value_col]    = value       (from the 'vh' half of hid)
    #   all other columns     = exactly 0   (zero weights, zero bias)
    head = jnp.dot(hid.astype(compute_dtype), wo_ref[...],
                   preferred_element_type=jnp.float32) + bo_ref[...]

    value = head[:, value_col:value_col + 1]                     # (tile, 1)
    # Zero padding columns contribute exactly 0 to the sum, so
    # sum(head) - value == sum(advantages).
    adv_sum = jnp.sum(head, axis=-1, keepdims=True) - value
    adv_mean = adv_sum * (1.0 / output_dim)

    # Lane-dense 128-wide store; columns [0, output_dim) hold the correct
    # q-values, the rest is sliced off in the wrapper.
    q_ref[...] = head + value - adv_mean


# ----------------------------------------------------------------------------
# Wrapper
# ----------------------------------------------------------------------------
def _default_batch_tile(B: int) -> int:
    # Big batches: 256-1024-row tiles fill MXU rows (>=256 for v6e/v7x's
    # 2x256 MXU) while keeping VMEM intermediates small (v7x has 64 MiB).
    for tile in (1024, 512, 256):
        if B >= 2 * tile and B % tile == 0:
            return tile
    # Medium batches: split in two so v7x can shard the 'parallel' batch axis
    # across both TensorCores (only when the half-tile keeps 8-sublane align).
    if B >= 16 and B % 2 == 0 and (B // 2) % 8 == 0:
        return B // 2
    # Small batches: single tile; per-grid-step overhead would dominate.
    return B


def _fuse_params(params, compute_dtype):
    """Build the fused hidden / block-diagonal head weights (done once, in the
    wrapper, not per grid step)."""
    h1, h2 = params["wv1"].shape
    output_dim = params["wa2"].shape[1]
    head_width = max(128, ((output_dim + 1 + 127) // 128) * 128)
    value_col = head_width - 1

    # Fused V/A hidden layer: columns [0,h2) = value stream, [h2,2*h2) = adv.
    w_hid = jnp.concatenate([params["wv1"], params["wa1"]], axis=1)   # (h1, 2*h2)
    b_hid = jnp.concatenate([params["bv1"], params["ba1"]], axis=1)   # (1, 2*h2)

    # Block-diagonal head.
    w_head = jnp.zeros((2 * h2, head_width), jnp.float32)
    w_head = w_head.at[:h2, value_col].set(params["wv2"][:, 0])       # value col
    w_head = w_head.at[h2:, :output_dim].set(params["wa2"])           # adv cols
    b_head = jnp.zeros((1, head_width), jnp.float32)
    b_head = b_head.at[:, value_col].set(params["bv2"][0, 0])
    b_head = b_head.at[:, :output_dim].set(params["ba2"][0, :])

    fused = {
        "w1": params["w1"].astype(compute_dtype), "b1": params["b1"],
        "w2": params["w2"].astype(compute_dtype), "b2": params["b2"],
        "w_hid": w_hid.astype(compute_dtype),     "b_hid": b_hid,
        "w_head": w_head.astype(compute_dtype),   "b_head": b_head,
    }
    return fused, output_dim, head_width, value_col


def attention_dueling_dqn_forward(x, params, *, batch_tile=None, use_bf16=True):
    """Dueling DQN forward pass as a single Pallas TPU kernel.

    x: (B, input_dim) float32
    params: dict with keys w1,b1,w2,b2,wv1,bv1,wv2,bv2,wa1,ba1,wa2,ba2
    use_bf16: feed the MXU bf16 operands (f32 accumulation) -- the fast path
              on v6e/v7x; set False for bit-faithful f32 semantics.
    """
    B, input_dim = x.shape
    compute_dtype = jnp.bfloat16 if use_bf16 else jnp.float32

    fused, output_dim, head_width, value_col = _fuse_params(params, compute_dtype)

    if batch_tile is None:
        batch_tile = _default_batch_tile(B)
    # TODO(synk): ragged batches unsupported -- pad B to a multiple of the tile.
    assert B % batch_tile == 0, "B must be a multiple of batch_tile"

    x_c = x.astype(compute_dtype)

    weight_order = ["w1", "b1", "w2", "b2", "w_hid", "b_hid", "w_head", "b_head"]
    weights = [fused[k] for k in weight_order]

    def const_spec(arr):
        nd = arr.ndim
        # Whole (small) array every grid step; constant index_map so the
        # pipeline does not re-DMA it across steps.
        return pl.BlockSpec(arr.shape, lambda i, _nd=nd: (0,) * _nd)

    in_specs = [pl.BlockSpec((batch_tile, input_dim), lambda i: (i, 0))]
    in_specs += [const_spec(w) for w in weights]
    out_spec = pl.BlockSpec((batch_tile, head_width), lambda i: (i, 0))

    kernel = functools.partial(
        dueling_dqn_kernel,
        output_dim=output_dim,
        value_col=value_col,
        compute_dtype=compute_dtype,
    )

    q_pad = pl.pallas_call(
        kernel,
        out_shape=jax.ShapeDtypeStruct((B, head_width), jnp.float32),
        grid_spec=pltpu.PrefetchScalarGridSpec(
            num_scalar_prefetch=0,
            grid=(B // batch_tile,),
            in_specs=in_specs,
            out_specs=out_spec,
        ),
        compiler_params=pltpu.CompilerParams(
            # Batch axis is independent -> shard across TensorCores on v7x.
            dimension_semantics=("parallel",),
        ),
    )(x_c, *weights)

    return q_pad[:, :output_dim]


# ----------------------------------------------------------------------------
# Parameter init + pure-JAX reference (PyTorch-equivalent semantics)
# ----------------------------------------------------------------------------
def init_params(key, input_dim, output_dim, hidden_dims=(256, 128)):
    """Deterministic parameter init (uniform, PyTorch Linear-like fan-in scaling)."""
    h0, h1 = hidden_dims
    h2 = h1 // 2
    shapes = {
        "w1": (input_dim, h0), "b1": (1, h0),
        "w2": (h0, h1),        "b2": (1, h1),
        "wv1": (h1, h2),       "bv1": (1, h2),
        "wv2": (h2, 1),        "bv2": (1, 1),
        "wa1": (h1, h2),       "ba1": (1, h2),
        "wa2": (h2, output_dim), "ba2": (1, output_dim),
    }
    fan_in = {
        "w1": input_dim, "b1": input_dim,
        "w2": h0, "b2": h0,
        "wv1": h1, "bv1": h1,
        "wv2": h2, "bv2": h2,
        "wa1": h1, "ba1": h1,
        "wa2": h2, "ba2": h2,
    }
    params = {}
    keys = jax.random.split(key, len(shapes))
    for k, (name, shape) in zip(keys, shapes.items()):
        bound = 1.0 / jnp.sqrt(jnp.float32(fan_in[name]))
        params[name] = jax.random.uniform(
            k, shape, dtype=jnp.float32, minval=-bound, maxval=bound
        )
    return params


def reference_forward(x, p):
    """Plain-JAX f32 reference identical to the PyTorch forward."""
    h = jax.nn.relu(x @ p["w1"] + p["b1"])
    f = jax.nn.relu(h @ p["w2"] + p["b2"])
    vh = jax.nn.relu(f @ p["wv1"] + p["bv1"])
    value = vh @ p["wv2"] + p["bv2"]
    ah = jax.nn.relu(f @ p["wa1"] + p["ba1"])
    adv = ah @ p["wa2"] + p["ba2"]
    return value + (adv - adv.mean(axis=1, keepdims=True))


if __name__ == "__main__":
    key = jax.random.PRNGKey(0)
    k_param, k_x = jax.random.split(key)

    # Small shapes consistent with the module defaults.
    batch = 8
    input_dim = 32
    output_dim = 8
    hidden_dims = (256, 128)

    params = init_params(k_param, input_dim, output_dim, hidden_dims)
    x = jax.random.normal(k_x, (batch, input_dim), dtype=jnp.float32)

    q_ref = reference_forward(x, params)

    # Exact-semantics check: f32 operand path must match the reference tightly.
    q_f32 = jax.block_until_ready(
        attention_dueling_dqn_forward(x, params, use_bf16=False)
    )
    assert q_f32.shape == (batch, output_dim)
    assert jnp.allclose(q_f32, q_ref, atol=1e-4, rtol=1e-4), "f32 mismatch vs. reference"

    # Default fast path: bf16 MXU operands, f32 accumulation (looser tolerance).
    q_bf16 = jax.block_until_ready(
        attention_dueling_dqn_forward(x, params, use_bf16=True)
    )
    assert q_bf16.shape == (batch, output_dim)
    assert jnp.allclose(q_bf16, q_ref, atol=5e-2, rtol=5e-2), "bf16 mismatch vs. reference"

    print("KERNEL_OK")
</pallas_src>

<mosaic_0001>
module attributes {stable_mosaic.version = 11 : i64} {
  func.func @dueling_dqn_kernel(%arg0: i32, %arg1: memref<8x32xf32, #tpu.memory_space<vmem>>, %arg2: memref<32x256xf32, #tpu.memory_space<vmem>>, %arg3: memref<1x256xf32, #tpu.memory_space<vmem>>, %arg4: memref<256x128xf32, #tpu.memory_space<vmem>>, %arg5: memref<1x128xf32, #tpu.memory_space<vmem>>, %arg6: memref<128x128xf32, #tpu.memory_space<vmem>>, %arg7: memref<1x128xf32, #tpu.memory_space<vmem>>, %arg8: memref<128x128xf32, #tpu.memory_space<vmem>>, %arg9: memref<1x128xf32, #tpu.memory_space<vmem>>, %arg10: memref<8x128xf32, #tpu.memory_space<vmem>>) attributes {dimension_semantics = [#tpu.dimension_semantics<parallel>], iteration_bounds = array<i64: 1>, scalar_prefetch = 0 : i64, scratch_operands = 0 : i64, tpu.core_type = #tpu.core_type<tc>, window_params = [{transform_indices = @transform_0, window_bounds = array<i64: 8, 32>}, {pipeline_mode = #tpu.pipeline_mode<synchronous>, transform_indices = @transform_1, window_bounds = array<i64: 32, 256>}, {pipeline_mode = #tpu.pipeline_mode<synchronous>, transform_indices = @transform_2, window_bounds = array<i64: 1, 256>}, {pipeline_mode = #tpu.pipeline_mode<synchronous>, transform_indices = @transform_3, window_bounds = array<i64: 256, 128>}, {pipeline_mode = #tpu.pipeline_mode<synchronous>, transform_indices = @transform_4, window_bounds = array<i64: 1, 128>}, {pipeline_mode = #tpu.pipeline_mode<synchronous>, transform_indices = @transform_5, window_bounds = array<i64: 128, 128>}, {pipeline_mode = #tpu.pipeline_mode<synchronous>, transform_indices = @transform_6, window_bounds = array<i64: 1, 128>}, {pipeline_mode = #tpu.pipeline_mode<synchronous>, transform_indices = @transform_7, window_bounds = array<i64: 128, 128>}, {pipeline_mode = #tpu.pipeline_mode<synchronous>, transform_indices = @transform_8, window_bounds = array<i64: 1, 128>}, {transform_indices = @transform_9, window_bounds = array<i64: 8, 128>}]} {
    %c0 = arith.constant 0 : index
    %c0_0 = arith.constant 0 : index
    %0 = vector.load %arg1[%c0, %c0_0] : memref<8x32xf32, #tpu.memory_space<vmem>>, vector<8x32xf32>
    %c0_1 = arith.constant 0 : index
    %c0_2 = arith.constant 0 : index
    %1 = vector.load %arg2[%c0_1, %c0_2] : memref<32x256xf32, #tpu.memory_space<vmem>>, vector<32x256xf32>
    %cst = arith.constant dense<0.000000e+00> : vector<8x256xf32>
    %2 = tpu.matmul %0, %1, %cst {dimension_numbers = #tpu.dot_dimension_numbers<[1], [0], [0], [1], [0, 0, 1, 1], [], []>} : vector<8x32xf32>, vector<32x256xf32>, vector<8x256xf32> -> vector<8x256xf32>
    %c0_3 = arith.constant 0 : index
    %c0_4 = arith.constant 0 : index
    %3 = vector.load %arg3[%c0_3, %c0_4] : memref<1x256xf32, #tpu.memory_space<vmem>>, vector<1x256xf32>
    %4 = vector.broadcast %3 : vector<1x256xf32> to vector<8x256xf32>
    %5 = arith.addf %2, %4 : vector<8x256xf32>
    %cst_5 = arith.constant 0.000000e+00 : f32
    %6 = vector.broadcast %cst_5 : f32 to vector<8x256xf32>
    %7 = arith.maximumf %5, %6 : vector<8x256xf32>
    %c0_6 = arith.constant 0 : index
    %c0_7 = arith.constant 0 : index
    %8 = vector.load %arg4[%c0_6, %c0_7] : memref<256x128xf32, #tpu.memory_space<vmem>>, vector<256x128xf32>
    %cst_8 = arith.constant dense<0.000000e+00> : vector<8x128xf32>
    %9 = tpu.matmul %7, %8, %cst_8 {dimension_numbers = #tpu.dot_dimension_numbers<[1], [0], [0], [1], [0, 0, 1, 1], [], []>} : vector<8x256xf32>, vector<256x128xf32>, vector<8x128xf32> -> vector<8x128xf32>
    %c0_9 = arith.constant 0 : index
    %c0_10 = arith.constant 0 : index
    %10 = vector.load %arg5[%c0_9, %c0_10] : memref<1x128xf32, #tpu.memory_space<vmem>>, vector<1x128xf32>
    %11 = vector.broadcast %10 : vector<1x128xf32> to vector<8x128xf32>
    %12 = arith.addf %9, %11 : vector<8x128xf32>
    %cst_11 = arith.constant 0.000000e+00 : f32
    %13 = vector.broadcast %cst_11 : f32 to vector<8x128xf32>
    %14 = arith.maximumf %12, %13 : vector<8x128xf32>
    %c0_12 = arith.constant 0 : index
    %c0_13 = arith.constant 0 : index
    %15 = vector.load %arg6[%c0_12, %c0_13] : memref<128x128xf32, #tpu.memory_space<vmem>>, vector<128x128xf32>
    %cst_14 = arith.constant dense<0.000000e+00> : vector<8x128xf32>
    %16 = tpu.matmul %14, %15, %cst_14 {dimension_numbers = #tpu.dot_dimension_numbers<[1], [0], [0], [1], [0, 0, 1, 1], [], []>} : vector<8x128xf32>, vector<128x128xf32>, vector<8x128xf32> -> vector<8x128xf32>
    %c0_15 = arith.constant 0 : index
    %c0_16 = arith.constant 0 : index
    %17 = vector.load %arg7[%c0_15, %c0_16] : memref<1x128xf32, #tpu.memory_space<vmem>>, vector<1x128xf32>
    %18 = vector.broadcast %17 : vector<1x128xf32> to vector<8x128xf32>
    %19 = arith.addf %16, %18 : vector<8x128xf32>
    %cst_17 = arith.constant 0.000000e+00 : f32
    %20 = vector.broadcast %cst_17 : f32 to vector<8x128xf32>
    %21 = arith.maximumf %19, %20 : vector<8x128xf32>
    %c0_18 = arith.constant 0 : index
    %c0_19 = arith.constant 0 : index
    %22 = vector.load %arg8[%c0_18, %c0_19] : memref<128x128xf32, #tpu.memory_space<vmem>>, vector<128x128xf32>
    %cst_20 = arith.constant dense<0.000000e+00> : vector<8x128xf32>
    %23 = tpu.matmul %21, %22, %cst_20 {dimension_numbers = #tpu.dot_dimension_numbers<[1], [0], [0], [1], [0, 0, 1, 1], [], []>} : vector<8x128xf32>, vector<128x128xf32>, vector<8x128xf32> -> vector<8x128xf32>
    %c0_21 = arith.constant 0 : index
    %c0_22 = arith.constant 0 : index
    %24 = vector.load %arg9[%c0_21, %c0_22] : memref<1x128xf32, #tpu.memory_space<vmem>>, vector<1x128xf32>
    %25 = vector.broadcast %24 : vector<1x128xf32> to vector<8x128xf32>
    %26 = arith.addf %23, %25 : vector<8x128xf32>
    %27 = vector.extract_strided_slice %26 {offsets = [0, 127], sizes = [8, 1], strides = [1, 1]} : vector<8x128xf32> to vector<8x1xf32>
    %cst_23 = arith.constant dense<0.000000e+00> : vector<8xf32>
    %28 = vector.multi_reduction <add>, %26, %cst_23 [1] : vector<8x128xf32> to vector<8xf32>
    %29 = vector.shape_cast %28 : vector<8xf32> to vector<8x1xf32>
    %30 = arith.subf %29, %27 : vector<8x1xf32>
    %cst_24 = arith.constant 1.250000e-01 : f32
    %31 = vector.broadcast %cst_24 : f32 to vector<8x1xf32>
    %32 = arith.mulf %30, %31 : vector<8x1xf32>
    %33 = vector.broadcast %27 : vector<8x1xf32> to vector<8x128xf32>
    %34 = arith.addf %26, %33 : vector<8x128xf32>
    %35 = vector.broadcast %32 : vector<8x1xf32> to vector<8x128xf32>
    %36 = arith.subf %34, %35 : vector<8x128xf32>
    %c0_25 = arith.constant 0 : index
    %c0_26 = arith.constant 0 : index
    %37 = vector.load %arg10[%c0_25, %c0_26] : memref<8x128xf32, #tpu.memory_space<vmem>>, vector<8x128xf32>
    tpu.vector_store %arg10[%c0_25, %c0_26], %36 {strides = array<i32>} : memref<8x128xf32, #tpu.memory_space<vmem>>, vector<8x128xf32>,
    return
  }
  func.func @transform_0(%arg0: i32) -> (i32, i32) {
    %c0_i32 = arith.constant 0 : i32
    %c0_i32_0 = arith.constant 0 : i32
    return %arg0, %c0_i32 : i32, i32
  }
  func.func @transform_1(%arg0: i32) -> (i32, i32) {
    %c0_i32 = arith.constant 0 : i32
    %c0_i32_0 = arith.constant 0 : i32
    %c0_i32_1 = arith.constant 0 : i32
    return %c0_i32, %c0_i32_0 : i32, i32
  }
  func.func @transform_2(%arg0: i32) -> (i32, i32) {
    %c0_i32 = arith.constant 0 : i32
    %c0_i32_0 = arith.constant 0 : i32
    %c0_i32_1 = arith.constant 0 : i32
    return %c0_i32, %c0_i32_0 : i32, i32
  }
  func.func @transform_3(%arg0: i32) -> (i32, i32) {
    %c0_i32 = arith.constant 0 : i32
    %c0_i32_0 = arith.constant 0 : i32
    %c0_i32_1 = arith.constant 0 : i32
    return %c0_i32, %c0_i32_0 : i32, i32
  }
  func.func @transform_4(%arg0: i32) -> (i32, i32) {
    %c0_i32 = arith.constant 0 : i32
    %c0_i32_0 = arith.constant 0 : i32
    %c0_i32_1 = arith.constant 0 : i32
    return %c0_i32, %c0_i32_0 : i32, i32
  }
  func.func @transform_5(%arg0: i32) -> (i32, i32) {
    %c0_i32 = arith.constant 0 : i32
    %c0_i32_0 = arith.constant 0 : i32
    %c0_i32_1 = arith.constant 0 : i32
    return %c0_i32, %c0_i32_0 : i32, i32
  }
  func.func @transform_6(%arg0: i32) -> (i32, i32) {
    %c0_i32 = arith.constant 0 : i32
    %c0_i32_0 = arith.constant 0 : i32
    %c0_i32_1 = arith.constant 0 : i32
    return %c0_i32, %c0_i32_0 : i32, i32
  }
  func.func @transform_7(%arg0: i32) -> (i32, i32) {
    %c0_i32 = arith.constant 0 : i32
    %c0_i32_0 = arith.constant 0 : i32
    %c0_i32_1 = arith.constant 0 : i32
    return %c0_i32, %c0_i32_0 : i32, i32
  }
  func.func @transform_8(%arg0: i32) -> (i32, i32) {
    %c0_i32 = arith.constant 0 : i32
    %c0_i32_0 = arith.constant 0 : i32
    %c0_i32_1 = arith.constant 0 : i32
    return %c0_i32, %c0_i32_0 : i32, i32
  }
  func.func @transform_9(%arg0: i32) -> (i32, i32) {
    %c0_i32 = arith.constant 0 : i32
    %c0_i32_0 = arith.constant 0 : i32
    return %arg0, %c0_i32 : i32, i32
  }
}

</mosaic_0001>

<bundles_post_ra>
// kernel: tpu_custom_call.1
= control target key start
LH: loop header
LB: loop body
LE: loop exit
PB: predicated region body
PF: predicated region fallthrough
CT: control target
= control target key end

     0   :  { %14 = vsyncpa [#allocation3], 0  ;;  %s951_s0 = inlined_call_operand.hbm [shape: f32[8,32], index: 0, kind: input, shape index: {}]   ;;  %s952_s1 = inlined_call_operand.hbm [shape: f32[32,256], index: 1, kind: input, shape index: {}]   ;;  %s953_s2 = inlined_call_operand.vmem [shape: f32[1,256], index: 2, kind: input, shape index: {}]   ;;  %s954_s3 = inlined_call_operand.hbm [shape: f32[256,128], index: 3, kind: input, shape index: {}]   ;;  %s955_s4 = inlined_call_operand.vmem [shape: f32[1,128], index: 4, kind: input, shape index: {}]   ;;  %s956_s5 = inlined_call_operand.hbm [shape: f32[128,128], index: 5, kind: input, shape index: {}]   ;;  %s957_s6 = inlined_call_operand.vmem [shape: f32[1,128], index: 6, kind: input, shape index: {}]   ;;  %s958_s7 = inlined_call_operand.hbm [shape: f32[128,128], index: 7, kind: input, shape index: {}]   ;;  %s959_s8 = inlined_call_operand.vmem [shape: f32[1,128], index: 8, kind: input, shape index: {}]   ;;  %s960_s9 = inlined_call_operand.hbm [shape: f32[8,128], index: 9, kind: output, shape index: {}]  }
   0x1   :  { %15 = vsyncpa [#allocation6], 0 }
   0x2   :  { %16 = vsyncpa [#allocation9], 0 }
   0x3   :  { %17 = vsyncpa [#allocation4], 0  ;;  %s814_s30 = smov [#allocation5]  }
   0x4   :  { %s33_s10 = sshll.u32 %s814_s30, 4  ;;  %s34_s10 = int_to_ptr.vmem [resolvable:$true] %s33_s10 }
   0x5   :  { %s694_s11 = scalar_lea.vmem %s34_s10, 1024  ;;  %p699_p1 = scmp.lt.s32.totalorder %s34_s10, %s34_s10 }
   0x6   :  { %p695_p0 = scmp.ne.s32.totalorder %s34_s10, %s694_s11  ;;  %p700_p2 = scmp.lt.s32.totalorder %s694_s11, %s694_s11 }
   0x8   :  { %p701_p3 = por %p700_p2, %p699_p1 }
   0xa   :  { %p702_p4 = pnand %p701_p3, %p695_p0 }
   0xc   :  { %705 = shalt.err (!%p702_p4)
}
   0xd   :  { %s815_s12 = smov 256   ;;  %s816_s13 = smov 16  }
   0xe   :  { %39 = dma.hbm_to_vmem [thread:$0]  %s952_s1, 1024, %s34_s10, [#allocation6], %s815_s12, %s815_s12, %s816_s13  }
   0xf   :  { %s817_s16 = smov [#allocation8]   ;;  %s818_s18 = smov [#allocation2]  }
  0x10   :  { %s61_s17 = sshll.u32 %s817_s16, 4  ;;  %s24_s19 = sshll.u32 %s818_s18, 4  ;;  %s62_s17 = int_to_ptr.vmem [resolvable:$true] %s61_s17  ;;  %s25_s19 = int_to_ptr.vmem [resolvable:$true] %s24_s19 }
  0x11   :  { %s714_s20 = scalar_lea.vmem %s62_s17, 2048  ;;  %p719_p6 = scmp.lt.s32.totalorder %s62_s17, %s62_s17 }
  0x12   :  { %p715_p5 = scmp.ne.s32.totalorder %s62_s17, %s714_s20  ;;  %p720_p7 = scmp.lt.s32.totalorder %s714_s20, %s714_s20 }
  0x14   :  { %p721_p8 = por %p720_p7, %p719_p6 }
  0x16   :  { %p722_p9 = pnand %p721_p8, %p715_p5 }
  0x18   :  { %725 = shalt.err (!%p722_p9)
}
  0x19   :  { %s819_s21 = smov 128   ;;  %s820_s22 = smov 8  }
  0x1a   :  { %67 = dma.hbm_to_vmem [thread:$0]  %s956_s5, 2048, %s62_s17, [#allocation9], %s819_s21, %s819_s21, %s820_s22  }
  0x1b   :  { %s734_s1 = scalar_lea.vmem %s25_s19, 128  ;;  %p739_p11 = scmp.lt.s32.totalorder %s25_s19, %s25_s19 }
  0x1c   :  { %p735_p10 = scmp.ne.s32.totalorder %s25_s19, %s734_s1  ;;  %p740_p12 = scmp.lt.s32.totalorder %s734_s1, %s734_s1 }
  0x1e   :  { %p741_p13 = por %p740_p12, %p739_p11 }
  0x20   :  { %p742_p0 = pnand %p741_p13, %p735_p10 }
  0x22   :  { %745 = shalt.err (!%p742_p0)
}
  0x23   :  { %27 = dma.hbm_to_vmem [thread:$0]  %s951_s0, 128, %s25_s19, [#allocation3]  }
  0x24   :  { %s821_s27 = smov [#allocation7]   ;;  %s822_s29 = smov [#allocation10]  }
  0x25   :  { %s47_s28 = sshll.u32 %s821_s27, 4  ;;  %s75_s30 = sshll.u32 %s822_s29, 4  ;;  %s48_s28 = int_to_ptr.vmem [resolvable:$true] %s47_s28  ;;  %s76_s30 = int_to_ptr.vmem [resolvable:$true] %s75_s30 }
  0x26   :  { %s754_s10 = scalar_lea.vmem %s48_s28, 4096  ;;  %p759_p2 = scmp.lt.s32.totalorder %s48_s28, %s48_s28 }
  0x27   :  { %p755_p1 = scmp.ne.s32.totalorder %s48_s28, %s754_s10  ;;  %p760_p3 = scmp.lt.s32.totalorder %s754_s10, %s754_s10 }
  0x29   :  { %p761_p4 = por %p760_p3, %p759_p2 }
  0x2b   :  { %p762_p5 = pnand %p761_p4, %p755_p1 }
  0x2d   :  { %765 = shalt.err (!%p762_p5)
}
  0x2e   :  { %53 = dma.hbm_to_vmem [thread:$0]  %s954_s3, 4096, %s48_s28, [#allocation6], %s819_s21, %s819_s21, %s820_s22  }
  0x2f   :  { %s774_s0 = scalar_lea.vmem %s76_s30, 2048  ;;  %p779_p7 = scmp.lt.s32.totalorder %s76_s30, %s76_s30 }
  0x30   :  { %p775_p6 = scmp.ne.s32.totalorder %s76_s30, %s774_s0  ;;  %p780_p8 = scmp.lt.s32.totalorder %s774_s0, %s774_s0 }
  0x32   :  { %p781_p9 = por %p780_p8, %p779_p7 }
  0x34   :  { %p782_p10 = pnand %p781_p9, %p775_p6 }
  0x36   :  { %785 = shalt.err (!%p782_p10)
}
  0x37   :  { %81 = dma.hbm_to_vmem [thread:$0]  %s958_s7, 2048, %s76_s30, [#allocation9], %s819_s21, %s819_s21, %s820_s22  }
  0x38   :  { %806 = dma.done.wait [#allocation3], 128  }
  0x39   :  { %807 = vsyncadd [#allocation3], 4294967168 }
  0x3a   :  { %808 = dma.done.wait [#allocation6], 5120  }
  0x3b   :  { %809 = vsyncadd [#allocation6], 4294962176 }
  0x3c   :  { %810 = dma.done.wait [#allocation9], 4096  }
  0x3d   :  { %811 = vsyncadd [#allocation9], 4294963200  ;;  %v823_v0 = vmov 0.0   ;;  %v107_v1 = vld [vmem:[#allocation5 + $0x38] sm:$0xff]  ;;  %v106_v2 = vld [vmem:[#allocation5 + $0x30] sm:$0xff]  ;;  %vm120_vm0 = vcmask 261120   ;;  %v110_v53 = vlaneseq }
  0x3e   :  { %188 = vmatprep.mubr.f32.mxu0 %v823_v0  ;;  %v105_v3 = vld [vmem:[#allocation5 + $0x28] sm:$0xff]  ;;  %148 = vmatprep.subr.mxu0 %v107_v1  ;;  %v104_v4 = vld [vmem:[#allocation5 + $0x20] sm:$0xff]  ;;  %v103_v5 = vld [vmem:[#allocation5 + $0x18] sm:$0xff]  ;;  %vm824_vm1 = vmmov 0  }
  0x3f   :  { %149 = vmatpush1.msra.mxu0 %v106_v2  ;;  %v102_v6 = vld [vmem:[#allocation5 + $0x10] sm:$0xff]  ;;  %v228_v7 = vld [vmem:[#allocation7 + $0xf8] sm:$0xff]  ;;  %v101_v10 = vld [vmem:[#allocation5 + $0x8] sm:$0xff]  ;;  %v111_v54 = vshrl.u32 %v110_v53, 7 }
  0x40   :  { %150 = vmatprep.subr.mxu0 %v105_v3  ;;  %v212_v8 = vld [vmem:[#allocation7 + $0x78] sm:$0xff]  ;;  %v227_v9 = vld [vmem:[#allocation7 + $0xf0] sm:$0xff]  ;;  %532 = vmatprep.subr.mxu1 %v228_v7  ;;  %v100_v12 = vld [vmem:[#allocation5] sm:$0xff] }
  0x41   :  { %151 = vmatpush1.msra.mxu0 %v104_v4  ;;  %v211_v11 = vld [vmem:[#allocation7 + $0x70] sm:$0xff]  ;;  %533 = vmatpush3.msra.mxu1 %v212_v8  ;;  %v226_v13 = vld [vmem:[#allocation7 + $0xe8] sm:$0xff]  ;;  %v99_v14 = vld [vmem:[#allocation2] sm:$0xff]  ;;  %v112_v55 = vsub.s32 0, %v111_v54  ;;  %v116_v57 = vsub.s32 1, %v111_v54 }
  0x42   :  { %152 = vmatprep.subr.mxu0 %v103_v5  ;;  %534 = vmatprep.subr.mxu1 %v227_v9  ;;  %v210_v15 = vld [vmem:[#allocation7 + $0x68] sm:$0xff]  ;;  %v225_v16 = vld [vmem:[#allocation7 + $0xe0] sm:$0xff]  ;;  %v224_v18 = vld [vmem:[#allocation7 + $0xd8] sm:$0xff] }
  0x43   :  { %153 = vmatpush1.msra.mxu0 %v102_v6  ;;  %535 = vmatpush3.msra.mxu1 %v211_v11  ;;  %v209_v17 = vld [vmem:[#allocation7 + $0x60] sm:$0xff]  ;;  %v208_v19 = vld [vmem:[#allocation7 + $0x58] sm:$0xff]  ;;  %v223_v20 = vld [vmem:[#allocation7 + $0xd0] sm:$0xff] }
  0x44   :  { %154 = vmatprep.subr.mxu0 %v101_v10  ;;  %536 = vmatprep.subr.mxu1 %v226_v13  ;;  %v207_v21 = vld [vmem:[#allocation7 + $0x50] sm:$0xff]  ;;  %v222_v22 = vld [vmem:[#allocation7 + $0xc8] sm:$0xff]  ;;  %v221_v24 = vld [vmem:[#allocation7 + $0xc0] sm:$0xff] }
  0x45   :  { %155 = vmatpush1.msra.mxu0 %v100_v12  ;;  %537 = vmatpush3.msra.mxu1 %v210_v15  ;;  %v206_v23 = vld [vmem:[#allocation7 + $0x48] sm:$0xff]  ;;  %v205_v25 = vld [vmem:[#allocation7 + $0x40] sm:$0xff]  ;;  %v220_v26 = vld [vmem:[#allocation7 + $0xb8] sm:$0xff] }
  0x46   :  { %528 = vmatmul.mubr.msk.f32.vlgmr.msra.gmra.mxu0 %vm120_vm0, %v99_v14  ;;  %538 = vmatprep.subr.mxu1 %v225_v16  ;;  %v204_v27 = vld [vmem:[#allocation7 + $0x38] sm:$0xff]  ;;  %v219_v28 = vld [vmem:[#allocation7 + $0xb0] sm:$0xff]  ;;  %v218_v30 = vld [vmem:[#allocation7 + $0xa8] sm:$0xff] }
  0x47   :  { %601 = vmatprep.subr.mxu0 %v823_v0  ;;  %539 = vmatpush3.msra.mxu1 %v209_v17  ;;  %v203_v29 = vld [vmem:[#allocation7 + $0x30] sm:$0xff]  ;;  %v202_v31 = vld [vmem:[#allocation7 + $0x28] sm:$0xff]  ;;  %v217_v32 = vld [vmem:[#allocation7 + $0xa0] sm:$0xff] }
  0x48   :  { %540 = vmatprep.subr.mxu1 %v224_v18  ;;  %v201_v33 = vld [vmem:[#allocation7 + $0x20] sm:$0xff]  ;;  %v216_v34 = vld [vmem:[#allocation7 + $0x98] sm:$0xff]  ;;  %v215_v36 = vld [vmem:[#allocation7 + $0x90] sm:$0xff]  ;;  %633 = vmatprep.mubr.msk.f32.mxu0 %vm824_vm1, %v823_v0 }
  0x49   :  { %541 = vmatpush3.msra.mxu1 %v208_v19  ;;  %v200_v35 = vld [vmem:[#allocation7 + $0x18] sm:$0xff]  ;;  %v199_v37 = vld [vmem:[#allocation7 + $0x10] sm:$0xff]  ;;  %v214_v38 = vld [vmem:[#allocation7 + $0x88] sm:$0xff] }
  0x4a   :  { %542 = vmatprep.subr.mxu1 %v223_v20  ;;  %v198_v39 = vld [vmem:[#allocation7 + $0x8] sm:$0xff]  ;;  %v213_v40 = vld [vmem:[#allocation7 + $0x80] sm:$0xff]  ;;  %v322_v42 = vld [vmem:[#allocation8 + $0x78] sm:$0xff] }
  0x4b   :  { %543 = vmatpush3.msra.mxu1 %v207_v21  ;;  %v197_v41 = vld [vmem:[#allocation7] sm:$0xff]  ;;  %v321_v43 = vld [vmem:[#allocation8 + $0x70] sm:$0xff]  ;;  %602 = vmatpush3.msra.mxu0 %v322_v42  ;;  %v320_v44 = vld [vmem:[#allocation8 + $0x68] sm:$0xff] }
  0x4c   :  { %544 = vmatprep.subr.mxu1 %v222_v22  ;;  %603 = vmatprep.subr.mxu0 %v823_v0  ;;  %v319_v45 = vld [vmem:[#allocation8 + $0x60] sm:$0xff]  ;;  %v318_v46 = vld [vmem:[#allocation8 + $0x58] sm:$0xff]  ;;  %v317_v47 = vld [vmem:[#allocation8 + $0x50] sm:$0xff] }
  0x4d   :  { %545 = vmatpush3.msra.mxu1 %v206_v23  ;;  %604 = vmatpush3.msra.mxu0 %v321_v43  ;;  %v316_v48 = vld [vmem:[#allocation8 + $0x48] sm:$0xff]  ;;  %v315_v49 = vld [vmem:[#allocation8 + $0x40] sm:$0xff]  ;;  %v314_v50 = vld [vmem:[#allocation8 + $0x38] sm:$0xff] }
  0x4e   :  { %546 = vmatprep.subr.mxu1 %v221_v24  ;;  %605 = vmatprep.subr.mxu0 %v823_v0  ;;  %v313_v51 = vld [vmem:[#allocation8 + $0x30] sm:$0xff]  ;;  %v312_v52 = vld [vmem:[#allocation8 + $0x28] sm:$0xff]  ;;  %v108_v56 = vld [vmem:[%s953_s2] sm:$0x3] }
  0x4f   :  { %547 = vmatpush3.msra.mxu1 %v205_v25  ;;  %606 = vmatpush3.msra.mxu0 %v320_v44  ;;  %v113_v58 = vrot.slane %v108_v56, %v112_v55  ;;  %v117_v59 = vrot.slane %v108_v56, %v116_v57  ;;  %v311_v3 = vld [vmem:[#allocation8 + $0x20] sm:$0xff]  ;;  %v310_v4 = vld [vmem:[#allocation8 + $0x18] sm:$0xff]  ;;  %v309_v5 = vld [vmem:[#allocation8 + $0x10] sm:$0xff] }
  0x50   :  { %548 = vmatprep.subr.mxu1 %v220_v26  ;;  %607 = vmatprep.subr.mxu0 %v823_v0  ;;  %v308_v6 = vld [vmem:[#allocation8 + $0x8] sm:$0xff]  ;;  %v307_v7 = vld [vmem:[#allocation8] sm:$0xff]  ;;  %v416_v8 = vld [vmem:[#allocation10 + $0x78] sm:$0xff] }
  0x51   :  { %549 = vmatpush3.msra.mxu1 %v204_v27  ;;  %608 = vmatpush3.msra.mxu0 %v319_v45  ;;  %v415_v9 = vld [vmem:[#allocation10 + $0x70] sm:$0xff]  ;;  %v414_v10 = vld [vmem:[#allocation10 + $0x68] sm:$0xff]  ;;  %v413_v11 = vld [vmem:[#allocation10 + $0x60] sm:$0xff] }
  0x52   :  { %550 = vmatprep.subr.mxu1 %v219_v28  ;;  %609 = vmatprep.subr.mxu0 %v823_v0  ;;  %v412_v12 = vld [vmem:[#allocation10 + $0x58] sm:$0xff]  ;;  %v411_v13 = vld [vmem:[#allocation10 + $0x50] sm:$0xff]  ;;  %v410_v14 = vld [vmem:[#allocation10 + $0x48] sm:$0xff] }
  0x53   :  { %551 = vmatpush3.msra.mxu1 %v203_v29  ;;  %610 = vmatpush3.msra.mxu0 %v318_v46  ;;  %v409_v15 = vld [vmem:[#allocation10 + $0x40] sm:$0xff]  ;;  %v408_v16 = vld [vmem:[#allocation10 + $0x38] sm:$0xff]  ;;  %v407_v17 = vld [vmem:[#allocation10 + $0x30] sm:$0xff] }
  0x54   :  { %552 = vmatprep.subr.mxu1 %v218_v30  ;;  %611 = vmatprep.subr.mxu0 %v823_v0  ;;  %v406_v18 = vld [vmem:[#allocation10 + $0x28] sm:$0xff]  ;;  %v405_v19 = vld [vmem:[#allocation10 + $0x20] sm:$0xff]  ;;  %v404_v20 = vld [vmem:[#allocation10 + $0x18] sm:$0xff] }
  0x55   :  { %553 = vmatpush3.msra.mxu1 %v202_v31  ;;  %612 = vmatpush3.msra.mxu0 %v317_v47  ;;  %v529_v22 = vld [vmem:[%s955_s4] ss:$0 sm:$0xff]  ;;  %v403_v27 = vld [vmem:[#allocation10 + $0x10] sm:$0xff]  ;;  %v402_v28 = vld [vmem:[#allocation10 + $0x8] sm:$0xff] }
  0x56   :  { %554 = vmatprep.subr.mxu1 %v217_v32  ;;  %613 = vmatprep.subr.mxu0 %v823_v0  ;;  %v401_v29 = vld [vmem:[#allocation10] sm:$0xff]  ;;  %v530_v30 = vld [vmem:[%s957_s6] ss:$0 sm:$0xff]  ;;  %s826_s6 = smov [#allocation11]  }
  0x57   :  { %555 = vmatpush3.msra.mxu1 %v201_v33  ;;  %614 = vmatpush3.msra.mxu0 %v316_v48  ;;  %s517_s18 = sshll.u32 %s826_s6, 4  ;;  %s518_s18 = int_to_ptr.vmem [resolvable:$true] %s517_s18 }
  0x58   :  { %556 = vmatprep.subr.mxu1 %v216_v34  ;;  %615 = vmatprep.subr.mxu0 %v823_v0  ;;  %s786_s19 = scalar_lea.vmem %s518_s18, 128  ;;  %p791_p12 = scmp.lt.s32.totalorder %s518_s18, %s518_s18 }
  0x59   :  { %557 = vmatpush3.msra.mxu1 %v200_v35  ;;  %616 = vmatpush3.msra.mxu0 %v315_v49  ;;  %v825_v35 = vmov 127   ;;  %p787_p11 = scmp.ne.s32.totalorder %s518_s18, %s786_s19  ;;  %p792_p13 = scmp.lt.s32.totalorder %s786_s19, %s786_s19 }
  0x5a   :  { %558 = vmatprep.subr.mxu1 %v215_v36  ;;  %617 = vmatprep.subr.mxu0 %v823_v0  ;;  %v531_v36 = vld [vmem:[%s959_s8] ss:$0 sm:$0xff] }
  0x5b   :  { %559 = vmatpush3.msra.mxu1 %v199_v37  ;;  %618 = vmatpush3.msra.mxu0 %v314_v50  ;;  %p793_p0 = por %p792_p13, %p791_p12 }
  0x5c   :  { %560 = vmatprep.subr.mxu1 %v214_v38  ;;  %619 = vmatprep.subr.mxu0 %v823_v0 }
  0x5d   :  { %561 = vmatpush3.msra.mxu1 %v198_v39  ;;  %620 = vmatpush3.msra.mxu0 %v313_v51  ;;  %p794_p1 = pnand %p793_p0, %p787_p11 }
  0x5e   :  { %562 = vmatprep.subr.mxu1 %v213_v40  ;;  %621 = vmatprep.subr.mxu0 %v823_v0 }
  0x5f   :  { %563 = vmatpush3.msra.mxu1 %v197_v41  ;;  %622 = vmatpush3.msra.mxu0 %v312_v52 }
  0x60   :  { %636 = vmatprep.subr.mxu1 %v823_v0  ;;  %623 = vmatprep.subr.mxu0 %v823_v0 }
  0x61   :  { %624 = vmatpush3.msra.mxu0 %v311_v3  ;;  %684 = vset.pattern.permute.xlu0 %v825_v35 }
  0x62   :  { %625 = vmatprep.subr.mxu0 %v823_v0  ;;  %685 = vset.pattern.permute.xlu1 %v825_v35 }
  0x63   :  { %626 = vmatpush3.msra.mxu0 %v310_v4 }
  0x64   :  { %627 = vmatprep.subr.mxu0 %v823_v0 }
  0x65   :  { %628 = vmatpush3.msra.mxu0 %v309_v5 }
  0x66   :  { %629 = vmatprep.subr.mxu0 %v823_v0 }
  0x67   :  { %630 = vmatpush3.msra.mxu0 %v308_v6 }
  0x68   :  { %631 = vmatprep.subr.mxu0 %v823_v0 }
  0x69   :  { %632 = vmatpush3.msra.mxu0 %v307_v7 }
 0x106   :  { %v190_v60 = vpop.f32.mrf.mxu0 }
 0x107   :  { %v191_v61 = vadd.f32 %v190_v60, %v113_v58 }
 0x108   :  { %v192_v62 = vpop.f32.mrf.mxu0 }
 0x109   :  { %v193_v63 = vadd.f32 %v192_v62, %v117_v59  ;;  %v195_v2 = vmax.f32 %v191_v61, 0.0 }
 0x10b   :  { %v196_v1 = vmax.f32 %v193_v63, 0.0 }
 0x10d   :  { %300 = vmatprep.mubr.f32.mxu1 %v196_v1 }
 0x10e   :  { %301 = vmatmul.mubr.f32.vlgmr.msra.gmra.mxu1 %v195_v2 }
 0x10f   :  { %668 = vmatprep.mubr.msk.f32.mxu1 %vm824_vm1, %v823_v0  ;;  %637 = vmatpush3.msra.mxu1 %v416_v8 }
 0x110   :  { %638 = vmatprep.subr.mxu1 %v823_v0 }
 0x111   :  { %639 = vmatpush3.msra.mxu1 %v415_v9 }
 0x112   :  { %640 = vmatprep.subr.mxu1 %v823_v0 }
 0x113   :  { %641 = vmatpush3.msra.mxu1 %v414_v10 }
 0x114   :  { %642 = vmatprep.subr.mxu1 %v823_v0 }
 0x115   :  { %643 = vmatpush3.msra.mxu1 %v413_v11 }
 0x116   :  { %644 = vmatprep.subr.mxu1 %v823_v0 }
 0x117   :  { %645 = vmatpush3.msra.mxu1 %v412_v12 }
 0x118   :  { %646 = vmatprep.subr.mxu1 %v823_v0 }
 0x119   :  { %647 = vmatpush3.msra.mxu1 %v411_v13 }
 0x11a   :  { %648 = vmatprep.subr.mxu1 %v823_v0 }
 0x11b   :  { %649 = vmatpush3.msra.mxu1 %v410_v14 }
 0x11c   :  { %650 = vmatprep.subr.mxu1 %v823_v0 }
 0x11d   :  { %651 = vmatpush3.msra.mxu1 %v409_v15 }
 0x11e   :  { %652 = vmatprep.subr.mxu1 %v823_v0 }
 0x11f   :  { %653 = vmatpush3.msra.mxu1 %v408_v16 }
 0x120   :  { %654 = vmatprep.subr.mxu1 %v823_v0 }
 0x121   :  { %655 = vmatpush3.msra.mxu1 %v407_v17 }
 0x122   :  { %656 = vmatprep.subr.mxu1 %v823_v0 }
 0x123   :  { %657 = vmatpush3.msra.mxu1 %v406_v18 }
 0x124   :  { %658 = vmatprep.subr.mxu1 %v823_v0 }
 0x125   :  { %659 = vmatpush3.msra.mxu1 %v405_v19 }
 0x126   :  { %660 = vmatprep.subr.mxu1 %v823_v0 }
 0x127   :  { %661 = vmatpush3.msra.mxu1 %v404_v20 }
 0x128   :  { %662 = vmatprep.subr.mxu1 %v823_v0 }
 0x129   :  { %663 = vmatpush3.msra.mxu1 %v403_v27 }
 0x12a   :  { %664 = vmatprep.subr.mxu1 %v823_v0 }
 0x12b   :  { %665 = vmatpush3.msra.mxu1 %v402_v28 }
 0x12c   :  { %666 = vmatprep.subr.mxu1 %v823_v0 }
 0x12d   :  { %667 = vmatpush3.msra.mxu1 %v401_v29 }
 0x1ce   :  { %v564_v21 = vpop.f32.mrf.mxu1 }
 0x1d0   :  { %v565_v23 = vpop.f32.mrf.mxu1 }
 0x1d1   :  { %v566_v24 = vadd.f32 %v565_v23, %v564_v21 }
 0x1d3   :  { %v303_v25 = vadd.f32 %v566_v24, %v529_v22 }
 0x1d5   :  { %v306_v26 = vmax.f32 %v303_v25, 0.0 }
 0x1d7   :  { %634 = vmatmul.mubr.f32.vlgmr.msra.gmra.mxu0 %v306_v26 }
 0x297   :  { %v396_v31 = vpop.f32.mrf.mxu0 }
 0x298   :  { %v397_v32 = vadd.f32 %v530_v30, %v396_v31 }
 0x299   :  { %v635_v33 = vpop.f32.mrf.mxu0 }
 0x29a   :  { %v400_v34 = vmax.f32 %v397_v32, 0.0 }
 0x29c   :  { %669 = vmatmul.mubr.f32.vlgmr.msra.gmra.mxu1 %v400_v34 }
 0x35c   :  { %v490_v37 = vpop.f32.mrf.mxu1 }
 0x35d   :  { %v491_v0 = vadd.f32 %v531_v36, %v490_v37 }
 0x35e   :  { %v670_v38 = vpop.f32.mrf.mxu1 }
 0x35f   :  { %494 = vadd.xlane.f32.xlu0 %v491_v0 }
 0x375   :  { %500 = vperm.xlu0 %684, %v491_v0  }
 0x3e8   :  { %v495_v39 = vpop.xlane.xlu0 %494 }
 0x3e9   :  { %v496_v40 = vsub.f32 %v495_v39, %v491_v0 }
 0x3eb   :  { %v497_v41 = vmul.f32 0.125, %v496_v40 }
 0x3ed   :  { %506 = vperm.xlu1 %685, %v497_v41  }
 0x3f0   :  { %v501_v42 = vpop.permute.xlu0 %500 }
 0x3f1   :  { %v503_v43 = vadd.f32 %v501_v42, %v491_v0 }
 0x468   :  { %v507_v44 = vpop.permute.xlu1 %506 }
 0x469   :  { %v509_v45 = vsub.f32 %v503_v43, %v507_v44 }
 0x46b   :  { %510 = vst [vmem:[#allocation11] sm:$0xff] %v509_v45 }
 0x46c   :  { %797 = shalt.err (!%p794_p1)
}
 0x46d   :  { %520 = dma.vmem_to_hbm [thread:$0]  %s518_s18, 128, %s960_s9, [#allocation4]  }
 0x46e   :  { %812 = dma.done.wait [#allocation4], 128  }
 0x46f   :  { %813 = vsyncadd [#allocation4], 4294967168 }
 0x470   :  { %524 = vsyncpa [#allocation3], 1 }
 0x471   :  { %525 = vsyncpa [#allocation6], 1 }
 0x472   :  { %526 = vsyncpa [#allocation9], 1 }
 0x473   :  { %527 = vsyncpa [#allocation4], 1 }

</bundles_post_ra>
